<compile_context>
chip_gen: v7x
topology: tpu7x:2x2x1
jax: 0.10.0
libtpu: 0.0.40
codegen_flags: <defaults>
</compile_context>

<pallas_src>
import functools
import math

import jax
import jax.numpy as jnp
from jax import lax
from jax.experimental import pallas as pl
from jax.experimental.pallas import tpu as pltpu


def _layernorm(x, w, b, eps=1e-5):
    mean = jnp.mean(x, axis=-1, keepdims=True)
    cen = x - mean
    var = jnp.mean(cen * cen, axis=-1, keepdims=True)
    return cen * lax.rsqrt(var + eps) * w + b


def _gelu_exact(x):
    # PyTorch nn.GELU() default (approximate='none'): 0.5*x*(1+erf(x/sqrt(2)))
    return 0.5 * x * (1.0 + lax.erf(x * (1.0 / math.sqrt(2.0))))


def transformer_block_kernel(
    x_q_ref,             # (1, TQ, D) f32   query-row tile (residual path)
    x_kv_ref,            # (1, S,  D) f32   full sequence (K/V source)
    w_in_ref,            # (D, 3D)    bf16  fused QKV weights, Q third pre-scaled
    b_in_ref,            # (1, 3D)    f32
    wo_ref,              # (D, D)     bf16  out-projection (pre-transposed)
    bo_ref,              # (1, D)     f32
    ln1w_ref, ln1b_ref,  # (1, D)     f32
    w1_ref,              # (D, F)     bf16
    b1_ref,              # (1, F)     f32
    w2_ref,              # (F, D)     bf16
    b2_ref,              # (1, D)     f32
    ln2w_ref, ln2b_ref,  # (1, D)     f32
    o_ref,               # (1, TQ, D) f32
    qkv_scratch,         # (S, 3D)    bf16  persists across q-blocks of a batch elt
    attn_scratch,        # (TQ, D)    f32   concatenated head outputs
    *, num_heads,
):
    TQ, D = x_q_ref.shape[1], x_q_ref.shape[2]
    S = x_kv_ref.shape[1]
    hd = D // num_heads

    # ---- fused QKV projection: one lane-dense matmul, once per batch element
    @pl.when(pl.program_id(1) == 0)
    def _():
        xkv = x_kv_ref[0].astype(jnp.bfloat16)                    # (S, D) bf16
        qkv = jnp.dot(xkv, w_in_ref[...],
                      preferred_element_type=jnp.float32) + b_in_ref[0]
        qkv_scratch[...] = qkv.astype(jnp.bfloat16)               # (S, 3D) bf16

    x_q = x_q_ref[0]                                              # (TQ, D) f32 residual
    row0 = pl.multiple_of(pl.program_id(1) * TQ, TQ)

    # ---- per-head attention; head outputs go into lane slabs of attn_scratch
    # TODO(synk): for very large S*H, replace the static head loop with
    # lax.fori_loop(unroll=2) + pl.ds lane reads to bound live score buffers.
    for h in range(num_heads):
        c0 = h * hd
        q_h = qkv_scratch[pl.ds(row0, TQ), c0:c0 + hd]            # (TQ, hd) bf16 (scaled)
        k_h = qkv_scratch[:, D + c0:D + c0 + hd]                  # (S, hd)  bf16
        v_h = qkv_scratch[:, 2 * D + c0:2 * D + c0 + hd]          # (S, hd)  bf16
        # Scores: contract the trailing head_dim of both operands.
        # TODO(synk): check Mosaic dump for a per-head vxpose here; if present,
        # store K pre-transposed in the scratch instead.
        s = lax.dot_general(q_h, k_h, (((1,), (1,)), ((), ())),
                            preferred_element_type=jnp.float32)   # (TQ, S) f32
        s = s - jnp.max(s, axis=-1, keepdims=True)
        p = jnp.exp(s)
        p = p * pl.reciprocal(jnp.sum(p, axis=-1, keepdims=True), approx=True)
        o_h = jnp.dot(p.astype(jnp.bfloat16), v_h,
                      preferred_element_type=jnp.float32)         # (TQ, hd) f32
        attn_scratch[:, c0:c0 + hd] = o_h

    # ---- single lane-dense out-projection over all heads
    attn = jnp.dot(attn_scratch[...].astype(jnp.bfloat16), wo_ref[...],
                   preferred_element_type=jnp.float32) + bo_ref[0]

    # ---- residual + LayerNorm 1 (f32)
    x1 = _layernorm(x_q + attn, ln1w_ref[0], ln1b_ref[0])

    # ---- FFN: Linear -> GELU(exact) -> Linear (bf16 MXU, f32 elementwise)
    h1 = jnp.dot(x1.astype(jnp.bfloat16), w1_ref[...],
                 preferred_element_type=jnp.float32) + b1_ref[0]
    h1 = _gelu_exact(h1)
    ffn = jnp.dot(h1.astype(jnp.bfloat16), w2_ref[...],
                  preferred_element_type=jnp.float32) + b2_ref[0]

    # ---- residual + LayerNorm 2
    o_ref[0] = _layernorm(x1 + ffn, ln2w_ref[0], ln2b_ref[0])


def transformer_block(x, kparams, num_heads, *, tq=None):
    """x: (B, S, D) float32. kparams: output of prepare_params()."""
    B, S, D = x.shape
    F = kparams["w1"].shape[1]

    ordered = [
        kparams["w_in"], kparams["b_in"],
        kparams["wo"], kparams["bo"],
        kparams["ln1_w"], kparams["ln1_b"],
        kparams["w1"], kparams["b1"], kparams["w2"], kparams["b2"],
        kparams["ln2_w"], kparams["ln2_b"],
    ]
    # Grid-invariant weights are fetched once -> single-buffered below.
    weight_bytes = sum(int(a.size) * a.dtype.itemsize for a in ordered)

    try:
        vmem_cap = int(pltpu.get_tpu_info().vmem_capacity_bytes)
    except Exception:
        vmem_cap = 128 * 1024 * 1024
    budget = int(0.85 * vmem_cap)       # headroom for Mosaic internal scratch

    def vmem_needed(t):
        return (weight_bytes                 # invariants, single-buffered
                + 2 * S * D * 4              # x_kv tile (double-buffered)
                + 4 * t * D * 4              # x_q + out tiles (double-buffered)
                + S * 3 * D * 2              # fused QKV scratch (bf16)
                + t * D * 4                  # concat-head scratch (f32)
                + 4 * S * 3 * D              # f32 QKV temp during projection
                + 4 * 2 * t * S              # scores + probs (f32)
                + 4 * 2 * t * F              # FFN hidden pre/post GELU (f32)
                + 4 * 6 * t * D              # misc row activations (f32)
                + (2 << 20))                 # slack

    if tq is None:
        cands = ([S] if S <= 512 else []) + \
                [c for c in (512, 256, 128, 64, 32, 16, 8) if c < S and S % c == 0]
        if not cands:
            cands = [S]
        tq = cands[-1]
        for c in cands:                      # largest q-tile that fits the budget
            if vmem_needed(c) <= budget:
                tq = c
                break
    nq = S // tq
    vmem_limit = int(min(budget, max(32 * 1024 * 1024, vmem_needed(tq))))

    def invariant(arr):
        zeros = (0,) * arr.ndim
        return pl.BlockSpec(arr.shape, lambda b, q: zeros,
                            pipeline_mode=pl.Buffered(1))

    kernel = functools.partial(transformer_block_kernel, num_heads=num_heads)

    # TODO(synk): when B == 1, recompute K/V per q-block and mark the q axis
    # "parallel" so both v7x TensorCores are used; here the q axis is
    # sequential because the fused QKV scratch is reused across q-blocks.
    return pl.pallas_call(
        kernel,
        out_shape=jax.ShapeDtypeStruct((B, S, D), jnp.float32),
        grid=(B, nq),
        in_specs=[pl.BlockSpec((1, tq, D), lambda b, q: (b, q, 0)),
                  pl.BlockSpec((1, S, D), lambda b, q: (b, 0, 0))]
                 + [invariant(a) for a in ordered],
        out_specs=pl.BlockSpec((1, tq, D), lambda b, q: (b, q, 0)),
        scratch_shapes=[pltpu.VMEM((S, 3 * D), jnp.bfloat16),
                        pltpu.VMEM((tq, D), jnp.float32)],
        compiler_params=pltpu.CompilerParams(
            dimension_semantics=("parallel", "arbitrary"),
            vmem_limit_bytes=vmem_limit,
        ),
    )(x, x, *ordered)


def init_params(key, d_model, d_ff):
    """Parameters in the PyTorch module's native layout."""
    ks = jax.random.split(key, 4)
    scale = 0.02
    return {
        "in_proj_w": scale * jax.random.normal(ks[0], (3 * d_model, d_model), jnp.float32),
        "in_proj_b": jnp.zeros((3 * d_model,), jnp.float32),
        "out_proj_w": scale * jax.random.normal(ks[1], (d_model, d_model), jnp.float32),
        "out_proj_b": jnp.zeros((d_model,), jnp.float32),
        "ln1_w": jnp.ones((d_model,), jnp.float32),
        "ln1_b": jnp.zeros((d_model,), jnp.float32),
        "w1": scale * jax.random.normal(ks[2], (d_ff, d_model), jnp.float32),
        "b1": jnp.zeros((d_ff,), jnp.float32),
        "w2": scale * jax.random.normal(ks[3], (d_model, d_ff), jnp.float32),
        "b2": jnp.zeros((d_model,), jnp.float32),
        "ln2_w": jnp.ones((d_model,), jnp.float32),
        "ln2_b": jnp.zeros((d_model,), jnp.float32),
    }


def prepare_params(params, num_heads):
    """One-time conversion PyTorch layout -> kernel layout: pre-transposed,
    fused QKV, bf16 matmul operands, 1/sqrt(head_dim) folded into the Q third."""
    D = params["out_proj_w"].shape[0]
    hd = D // num_heads
    sm_scale = 1.0 / math.sqrt(hd)

    # Fused in-projection: qkv = x @ w_in + b_in with columns [Q | K | V],
    # per-head slabs of width hd inside each third (matches PyTorch row order).
    col_scale = jnp.concatenate([jnp.full((D,), sm_scale, jnp.float32),
                                 jnp.ones((2 * D,), jnp.float32)])
    w_in = (params["in_proj_w"].T * col_scale[None, :]).astype(jnp.bfloat16)   # (D, 3D)
    b_in = (params["in_proj_b"] * col_scale).reshape(1, 3 * D).astype(jnp.float32)

    return {
        "w_in": w_in, "b_in": b_in,
        "wo": params["out_proj_w"].T.astype(jnp.bfloat16),                     # (D, D)
        "bo": params["out_proj_b"].reshape(1, D).astype(jnp.float32),
        "ln1_w": params["ln1_w"].reshape(1, D).astype(jnp.float32),
        "ln1_b": params["ln1_b"].reshape(1, D).astype(jnp.float32),
        "w1": params["w1"].T.astype(jnp.bfloat16),                             # (D, F)
        "b1": params["b1"].reshape(1, -1).astype(jnp.float32),
        "w2": params["w2"].T.astype(jnp.bfloat16),                             # (F, D)
        "b2": params["b2"].reshape(1, D).astype(jnp.float32),
        "ln2_w": params["ln2_w"].reshape(1, D).astype(jnp.float32),
        "ln2_b": params["ln2_b"].reshape(1, D).astype(jnp.float32),
    }


def reference_block(x, params, num_heads):
    """Pure-JAX f32 reference matching the PyTorch module in eval mode."""
    D = x.shape[-1]
    hd = D // num_heads
    qkv = jnp.einsum("bsd,ed->bse", x, params["in_proj_w"]) + params["in_proj_b"]
    q, k, v = qkv[..., :D], qkv[..., D:2 * D], qkv[..., 2 * D:]

    def split(t):
        B, S, _ = t.shape
        return t.reshape(B, S, num_heads, hd).transpose(0, 2, 1, 3)

    q, k, v = split(q), split(k), split(v)
    s = jnp.einsum("bhqd,bhkd->bhqk", q, k) / math.sqrt(hd)
    p = jax.nn.softmax(s, axis=-1)
    o = jnp.einsum("bhqk,bhkd->bhqd", p, v)
    B, _, S, _ = o.shape
    o = o.transpose(0, 2, 1, 3).reshape(B, S, D)
    attn = o @ params["out_proj_w"].T + params["out_proj_b"]

    def ln(t, w, b, eps=1e-5):
        m = t.mean(-1, keepdims=True)
        var = ((t - m) ** 2).mean(-1, keepdims=True)
        return (t - m) / jnp.sqrt(var + eps) * w + b

    x1 = ln(x + attn, params["ln1_w"], params["ln1_b"])
    h = x1 @ params["w1"].T + params["b1"]
    h = 0.5 * h * (1.0 + lax.erf(h / math.sqrt(2.0)))
    f = h @ params["w2"].T + params["b2"]
    return ln(x1 + f, params["ln2_w"], params["ln2_b"])


if __name__ == "__main__":
    B, S = 2, 8
    d_model, num_heads, d_ff = 32, 4, 64

    key = jax.random.PRNGKey(0)
    k_x, k_p = jax.random.split(key)
    x = jax.random.normal(k_x, (B, S, d_model), jnp.float32)
    params = init_params(k_p, d_model, d_ff)
    kernel_params = prepare_params(params, num_heads)

    out = transformer_block(x, kernel_params, num_heads)
    out = jax.block_until_ready(out)
    assert out.shape == (B, S, d_model) and out.dtype == jnp.float32
    assert bool(jnp.all(jnp.isfinite(out)))

    # Tolerance check vs. the f32 reference (bf16 weights + approx reciprocal
    # give ~1e-3-level divergence; 5e-2 is a loose inference-grade bound).
    ref = reference_block(x, params, num_heads)
    err = float(jnp.max(jnp.abs(out - ref)))
    assert err < 5e-2, f"max abs error vs f32 reference: {err}"
    print("KERNEL_OK")
</pallas_src>

<mosaic_0001>
module attributes {stable_mosaic.version = 11 : i64} {
  func.func @transformer_block_kernel(%arg0: i32, %arg1: i32, %arg2: memref<1x8x32xf32, #tpu.memory_space<vmem>>, %arg3: memref<1x8x32xf32, #tpu.memory_space<vmem>>, %arg4: memref<32x96xbf16, #tpu.memory_space<vmem>>, %arg5: memref<1x96xf32, #tpu.memory_space<vmem>>, %arg6: memref<32x32xbf16, #tpu.memory_space<vmem>>, %arg7: memref<1x32xf32, #tpu.memory_space<vmem>>, %arg8: memref<1x32xf32, #tpu.memory_space<vmem>>, %arg9: memref<1x32xf32, #tpu.memory_space<vmem>>, %arg10: memref<32x64xbf16, #tpu.memory_space<vmem>>, %arg11: memref<1x64xf32, #tpu.memory_space<vmem>>, %arg12: memref<64x32xbf16, #tpu.memory_space<vmem>>, %arg13: memref<1x32xf32, #tpu.memory_space<vmem>>, %arg14: memref<1x32xf32, #tpu.memory_space<vmem>>, %arg15: memref<1x32xf32, #tpu.memory_space<vmem>>, %arg16: memref<1x8x32xf32, #tpu.memory_space<vmem>>, %arg17: memref<8x96xbf16, #tpu.memory_space<vmem>>, %arg18: memref<8x32xf32, #tpu.memory_space<vmem>>) attributes {dimension_semantics = [#tpu.dimension_semantics<parallel>, #tpu.dimension_semantics<arbitrary>], iteration_bounds = array<i64: 2, 1>, scalar_prefetch = 0 : i64, scratch_operands = 2 : i64, tpu.core_type = #tpu.core_type<tc>, window_params = [{transform_indices = @transform_0, window_bounds = array<i64: 1, 8, 32>}, {transform_indices = @transform_1, window_bounds = array<i64: 1, 8, 32>}, {pipeline_mode = #tpu.pipeline_mode<synchronous>, transform_indices = @transform_2, window_bounds = array<i64: 32, 96>}, {pipeline_mode = #tpu.pipeline_mode<synchronous>, transform_indices = @transform_3, window_bounds = array<i64: 1, 96>}, {pipeline_mode = #tpu.pipeline_mode<synchronous>, transform_indices = @transform_4, window_bounds = array<i64: 32, 32>}, {pipeline_mode = #tpu.pipeline_mode<synchronous>, transform_indices = @transform_5, window_bounds = array<i64: 1, 32>}, {pipeline_mode = #tpu.pipeline_mode<synchronous>, transform_indices = @transform_6, window_bounds = array<i64: 1, 32>}, {pipeline_mode = #tpu.pipeline_mode<synchronous>, transform_indices = @transform_7, window_bounds = array<i64: 1, 32>}, {pipeline_mode = #tpu.pipeline_mode<synchronous>, transform_indices = @transform_8, window_bounds = array<i64: 32, 64>}, {pipeline_mode = #tpu.pipeline_mode<synchronous>, transform_indices = @transform_9, window_bounds = array<i64: 1, 64>}, {pipeline_mode = #tpu.pipeline_mode<synchronous>, transform_indices = @transform_10, window_bounds = array<i64: 64, 32>}, {pipeline_mode = #tpu.pipeline_mode<synchronous>, transform_indices = @transform_11, window_bounds = array<i64: 1, 32>}, {pipeline_mode = #tpu.pipeline_mode<synchronous>, transform_indices = @transform_12, window_bounds = array<i64: 1, 32>}, {pipeline_mode = #tpu.pipeline_mode<synchronous>, transform_indices = @transform_13, window_bounds = array<i64: 1, 32>}, {transform_indices = @transform_14, window_bounds = array<i64: 1, 8, 32>}]} {
    %c0_i32 = arith.constant 0 : i32
    %0 = arith.cmpi eq, %arg1, %c0_i32 : i32
    %1 = arith.extui %0 : i1 to i32
    %c0_i32_0 = arith.constant 0 : i32
    %2 = arith.cmpi ne, %1, %c0_i32_0 : i32
    scf.if %2 {
      %c0_76 = arith.constant 0 : index
      %c0_77 = arith.constant 0 : index
      %c0_78 = arith.constant 0 : index
      %169 = vector.load %arg3[%c0_76, %c0_77, %c0_78] : memref<1x8x32xf32, #tpu.memory_space<vmem>>, vector<1x8x32xf32>
      %170 = vector.shape_cast %169 : vector<1x8x32xf32> to vector<8x32xf32>
      %171 = arith.truncf %170 : vector<8x32xf32> to vector<8x32xbf16>
      %c0_79 = arith.constant 0 : index
      %c0_80 = arith.constant 0 : index
      %172 = vector.load %arg4[%c0_79, %c0_80] : memref<32x96xbf16, #tpu.memory_space<vmem>>, vector<32x96xbf16>
      %cst_81 = arith.constant dense<0.000000e+00> : vector<8x96xf32>
      %173 = tpu.matmul %171, %172, %cst_81 {dimension_numbers = #tpu.dot_dimension_numbers<[1], [0], [0], [1], [0, 0, 1, 1], [], []>} : vector<8x32xbf16>, vector<32x96xbf16>, vector<8x96xf32> -> vector<8x96xf32>
      %c0_82 = arith.constant 0 : index
      %c0_83 = arith.constant 0 : index
      %174 = vector.load %arg5[%c0_82, %c0_83] : memref<1x96xf32, #tpu.memory_space<vmem>>, vector<1x96xf32>
      %175 = vector.shape_cast %174 : vector<1x96xf32> to vector<96xf32>
      %176 = vector.shape_cast %175 : vector<96xf32> to vector<1x96xf32>
      %177 = vector.broadcast %176 : vector<1x96xf32> to vector<8x96xf32>
      %178 = arith.addf %173, %177 : vector<8x96xf32>
      %179 = arith.truncf %178 : vector<8x96xf32> to vector<8x96xbf16>
      %c0_84 = arith.constant 0 : index
      %c0_85 = arith.constant 0 : index
      %180 = vector.load %arg17[%c0_84, %c0_85] : memref<8x96xbf16, #tpu.memory_space<vmem>>, vector<8x96xbf16>
      tpu.vector_store %arg17[%c0_84, %c0_85], %179 {strides = array<i32>} : memref<8x96xbf16, #tpu.memory_space<vmem>>, vector<8x96xbf16>,
    } else {
    }
    %c0 = arith.constant 0 : index
    %c0_1 = arith.constant 0 : index
    %c0_2 = arith.constant 0 : index
    %3 = vector.load %arg2[%c0, %c0_1, %c0_2] : memref<1x8x32xf32, #tpu.memory_space<vmem>>, vector<1x8x32xf32>
    %4 = vector.shape_cast %3 : vector<1x8x32xf32> to vector<8x32xf32>
    %c8_i32 = arith.constant 8 : i32
    %5 = arith.muli %arg1, %c8_i32 : i32
    %6 = tpu.assume_multiple %5, 8 : i32
    %7 = arith.index_cast %6 : i32 to index
    %c0_3 = arith.constant 0 : index
    %8 = vector.load %arg17[%7, %c0_3] : memref<8x96xbf16, #tpu.memory_space<vmem>>, vector<8x8xbf16>
    %c0_4 = arith.constant 0 : index
    %c32 = arith.constant 32 : index
    %9 = vector.load %arg17[%c0_4, %c32] : memref<8x96xbf16, #tpu.memory_space<vmem>>, vector<8x8xbf16>
    %c0_5 = arith.constant 0 : index
    %c64 = arith.constant 64 : index
    %10 = vector.load %arg17[%c0_5, %c64] : memref<8x96xbf16, #tpu.memory_space<vmem>>, vector<8x8xbf16>
    %cst = arith.constant dense<0.000000e+00> : vector<8x8xf32>
    %11 = tpu.matmul %8, %9, %cst {dimension_numbers = #tpu.dot_dimension_numbers<[1], [1], [0], [0], [0, 0, 1, 0], [], []>} : vector<8x8xbf16>, vector<8x8xbf16>, vector<8x8xf32> -> vector<8x8xf32>
    %cst_6 = arith.constant dense<0xFF800000> : vector<8xf32>
    %12 = vector.multi_reduction <maximumf>, %11, %cst_6 [1] : vector<8x8xf32> to vector<8xf32>
    %13 = vector.shape_cast %12 : vector<8xf32> to vector<8x1xf32>
    %14 = vector.broadcast %13 : vector<8x1xf32> to vector<8x8xf32>
    %15 = arith.subf %11, %14 : vector<8x8xf32>
    %16 = math.exp %15 : vector<8x8xf32>
    %cst_7 = arith.constant dense<0.000000e+00> : vector<8xf32>
    %17 = vector.multi_reduction <add>, %16, %cst_7 [1] : vector<8x8xf32> to vector<8xf32>
    %18 = vector.shape_cast %17 : vector<8xf32> to vector<8x1xf32>
    %19 = tpu.reciprocal %18 {approx = true} : vector<8x1xf32> -> vector<8x1xf32>
    %20 = vector.broadcast %19 : vector<8x1xf32> to vector<8x8xf32>
    %21 = arith.mulf %16, %20 : vector<8x8xf32>
    %22 = arith.truncf %21 : vector<8x8xf32> to vector<8x8xbf16>
    %cst_8 = arith.constant dense<0.000000e+00> : vector<8x8xf32>
    %23 = tpu.matmul %22, %10, %cst_8 {dimension_numbers = #tpu.dot_dimension_numbers<[1], [0], [0], [1], [0, 0, 1, 1], [], []>} : vector<8x8xbf16>, vector<8x8xbf16>, vector<8x8xf32> -> vector<8x8xf32>
    %c0_9 = arith.constant 0 : index
    %c0_10 = arith.constant 0 : index
    %24 = vector.load %arg18[%c0_9, %c0_10] : memref<8x32xf32, #tpu.memory_space<vmem>>, vector<8x8xf32>
    tpu.vector_store %arg18[%c0_9, %c0_10], %23 {strides = array<i32>} : memref<8x32xf32, #tpu.memory_space<vmem>>, vector<8x8xf32>,
    %25 = arith.index_cast %6 : i32 to index
    %c8 = arith.constant 8 : index
    %26 = vector.load %arg17[%25, %c8] : memref<8x96xbf16, #tpu.memory_space<vmem>>, vector<8x8xbf16>
    %c0_11 = arith.constant 0 : index
    %c40 = arith.constant 40 : index
    %27 = vector.load %arg17[%c0_11, %c40] : memref<8x96xbf16, #tpu.memory_space<vmem>>, vector<8x8xbf16>
    %c0_12 = arith.constant 0 : index
    %c72 = arith.constant 72 : index
    %28 = vector.load %arg17[%c0_12, %c72] : memref<8x96xbf16, #tpu.memory_space<vmem>>, vector<8x8xbf16>
    %cst_13 = arith.constant dense<0.000000e+00> : vector<8x8xf32>
    %29 = tpu.matmul %26, %27, %cst_13 {dimension_numbers = #tpu.dot_dimension_numbers<[1], [1], [0], [0], [0, 0, 1, 0], [], []>} : vector<8x8xbf16>, vector<8x8xbf16>, vector<8x8xf32> -> vector<8x8xf32>
    %cst_14 = arith.constant dense<0xFF800000> : vector<8xf32>
    %30 = vector.multi_reduction <maximumf>, %29, %cst_14 [1] : vector<8x8xf32> to vector<8xf32>
    %31 = vector.shape_cast %30 : vector<8xf32> to vector<8x1xf32>
    %32 = vector.broadcast %31 : vector<8x1xf32> to vector<8x8xf32>
    %33 = arith.subf %29, %32 : vector<8x8xf32>
    %34 = math.exp %33 : vector<8x8xf32>
    %cst_15 = arith.constant dense<0.000000e+00> : vector<8xf32>
    %35 = vector.multi_reduction <add>, %34, %cst_15 [1] : vector<8x8xf32> to vector<8xf32>
    %36 = vector.shape_cast %35 : vector<8xf32> to vector<8x1xf32>
    %37 = tpu.reciprocal %36 {approx = true} : vector<8x1xf32> -> vector<8x1xf32>
    %38 = vector.broadcast %37 : vector<8x1xf32> to vector<8x8xf32>
    %39 = arith.mulf %34, %38 : vector<8x8xf32>
    %40 = arith.truncf %39 : vector<8x8xf32> to vector<8x8xbf16>
    %cst_16 = arith.constant dense<0.000000e+00> : vector<8x8xf32>
    %41 = tpu.matmul %40, %28, %cst_16 {dimension_numbers = #tpu.dot_dimension_numbers<[1], [0], [0], [1], [0, 0, 1, 1], [], []>} : vector<8x8xbf16>, vector<8x8xbf16>, vector<8x8xf32> -> vector<8x8xf32>
    %c0_17 = arith.constant 0 : index
    %c8_18 = arith.constant 8 : index
    %42 = vector.load %arg18[%c0_17, %c8_18] : memref<8x32xf32, #tpu.memory_space<vmem>>, vector<8x8xf32>
    tpu.vector_store %arg18[%c0_17, %c8_18], %41 {strides = array<i32>} : memref<8x32xf32, #tpu.memory_space<vmem>>, vector<8x8xf32>,
    %43 = arith.index_cast %6 : i32 to index
    %c16 = arith.constant 16 : index
    %44 = vector.load %arg17[%43, %c16] : memref<8x96xbf16, #tpu.memory_space<vmem>>, vector<8x8xbf16>
    %c0_19 = arith.constant 0 : index
    %c48 = arith.constant 48 : index
    %45 = vector.load %arg17[%c0_19, %c48] : memref<8x96xbf16, #tpu.memory_space<vmem>>, vector<8x8xbf16>
    %c0_20 = arith.constant 0 : index
    %c80 = arith.constant 80 : index
    %46 = vector.load %arg17[%c0_20, %c80] : memref<8x96xbf16, #tpu.memory_space<vmem>>, vector<8x8xbf16>
    %cst_21 = arith.constant dense<0.000000e+00> : vector<8x8xf32>
    %47 = tpu.matmul %44, %45, %cst_21 {dimension_numbers = #tpu.dot_dimension_numbers<[1], [1], [0], [0], [0, 0, 1, 0], [], []>} : vector<8x8xbf16>, vector<8x8xbf16>, vector<8x8xf32> -> vector<8x8xf32>
    %cst_22 = arith.constant dense<0xFF800000> : vector<8xf32>
    %48 = vector.multi_reduction <maximumf>, %47, %cst_22 [1] : vector<8x8xf32> to vector<8xf32>
    %49 = vector.shape_cast %48 : vector<8xf32> to vector<8x1xf32>
    %50 = vector.broadcast %49 : vector<8x1xf32> to vector<8x8xf32>
    %51 = arith.subf %47, %50 : vector<8x8xf32>
    %52 = math.exp %51 : vector<8x8xf32>
    %cst_23 = arith.constant dense<0.000000e+00> : vector<8xf32>
    %53 = vector.multi_reduction <add>, %52, %cst_23 [1] : vector<8x8xf32> to vector<8xf32>
    %54 = vector.shape_cast %53 : vector<8xf32> to vector<8x1xf32>
    %55 = tpu.reciprocal %54 {approx = true} : vector<8x1xf32> -> vector<8x1xf32>
    %56 = vector.broadcast %55 : vector<8x1xf32> to vector<8x8xf32>
    %57 = arith.mulf %52, %56 : vector<8x8xf32>
    %58 = arith.truncf %57 : vector<8x8xf32> to vector<8x8xbf16>
    %cst_24 = arith.constant dense<0.000000e+00> : vector<8x8xf32>
    %59 = tpu.matmul %58, %46, %cst_24 {dimension_numbers = #tpu.dot_dimension_numbers<[1], [0], [0], [1], [0, 0, 1, 1], [], []>} : vector<8x8xbf16>, vector<8x8xbf16>, vector<8x8xf32> -> vector<8x8xf32>
    %c0_25 = arith.constant 0 : index
    %c16_26 = arith.constant 16 : index
    %60 = vector.load %arg18[%c0_25, %c16_26] : memref<8x32xf32, #tpu.memory_space<vmem>>, vector<8x8xf32>
    tpu.vector_store %arg18[%c0_25, %c16_26], %59 {strides = array<i32>} : memref<8x32xf32, #tpu.memory_space<vmem>>, vector<8x8xf32>,
    %61 = arith.index_cast %6 : i32 to index
    %c24 = arith.constant 24 : index
    %62 = vector.load %arg17[%61, %c24] : memref<8x96xbf16, #tpu.memory_space<vmem>>, vector<8x8xbf16>
    %c0_27 = arith.constant 0 : index
    %c56 = arith.constant 56 : index
    %63 = vector.load %arg17[%c0_27, %c56] : memref<8x96xbf16, #tpu.memory_space<vmem>>, vector<8x8xbf16>
    %c0_28 = arith.constant 0 : index
    %c88 = arith.constant 88 : index
    %64 = vector.load %arg17[%c0_28, %c88] : memref<8x96xbf16, #tpu.memory_space<vmem>>, vector<8x8xbf16>
    %cst_29 = arith.constant dense<0.000000e+00> : vector<8x8xf32>
    %65 = tpu.matmul %62, %63, %cst_29 {dimension_numbers = #tpu.dot_dimension_numbers<[1], [1], [0], [0], [0, 0, 1, 0], [], []>} : vector<8x8xbf16>, vector<8x8xbf16>, vector<8x8xf32> -> vector<8x8xf32>
    %cst_30 = arith.constant dense<0xFF800000> : vector<8xf32>
    %66 = vector.multi_reduction <maximumf>, %65, %cst_30 [1] : vector<8x8xf32> to vector<8xf32>
    %67 = vector.shape_cast %66 : vector<8xf32> to vector<8x1xf32>
    %68 = vector.broadcast %67 : vector<8x1xf32> to vector<8x8xf32>
    %69 = arith.subf %65, %68 : vector<8x8xf32>
    %70 = math.exp %69 : vector<8x8xf32>
    %cst_31 = arith.constant dense<0.000000e+00> : vector<8xf32>
    %71 = vector.multi_reduction <add>, %70, %cst_31 [1] : vector<8x8xf32> to vector<8xf32>
    %72 = vector.shape_cast %71 : vector<8xf32> to vector<8x1xf32>
    %73 = tpu.reciprocal %72 {approx = true} : vector<8x1xf32> -> vector<8x1xf32>
    %74 = vector.broadcast %73 : vector<8x1xf32> to vector<8x8xf32>
    %75 = arith.mulf %70, %74 : vector<8x8xf32>
    %76 = arith.truncf %75 : vector<8x8xf32> to vector<8x8xbf16>
    %cst_32 = arith.constant dense<0.000000e+00> : vector<8x8xf32>
    %77 = tpu.matmul %76, %64, %cst_32 {dimension_numbers = #tpu.dot_dimension_numbers<[1], [0], [0], [1], [0, 0, 1, 1], [], []>} : vector<8x8xbf16>, vector<8x8xbf16>, vector<8x8xf32> -> vector<8x8xf32>
    %c0_33 = arith.constant 0 : index
    %c24_34 = arith.constant 24 : index
    %78 = vector.load %arg18[%c0_33, %c24_34] : memref<8x32xf32, #tpu.memory_space<vmem>>, vector<8x8xf32>
    tpu.vector_store %arg18[%c0_33, %c24_34], %77 {strides = array<i32>} : memref<8x32xf32, #tpu.memory_space<vmem>>, vector<8x8xf32>,
    %c0_35 = arith.constant 0 : index
    %c0_36 = arith.constant 0 : index
    %79 = vector.load %arg18[%c0_35, %c0_36] : memref<8x32xf32, #tpu.memory_space<vmem>>, vector<8x32xf32>
    %80 = arith.truncf %79 : vector<8x32xf32> to vector<8x32xbf16>
    %c0_37 = arith.constant 0 : index
    %c0_38 = arith.constant 0 : index
    %81 = vector.load %arg6[%c0_37, %c0_38] : memref<32x32xbf16, #tpu.memory_space<vmem>>, vector<32x32xbf16>
    %cst_39 = arith.constant dense<0.000000e+00> : vector<8x32xf32>
    %82 = tpu.matmul %80, %81, %cst_39 {dimension_numbers = #tpu.dot_dimension_numbers<[1], [0], [0], [1], [0, 0, 1, 1], [], []>} : vector<8x32xbf16>, vector<32x32xbf16>, vector<8x32xf32> -> vector<8x32xf32>
    %c0_40 = arith.constant 0 : index
    %c0_41 = arith.constant 0 : index
    %83 = vector.load %arg7[%c0_40, %c0_41] : memref<1x32xf32, #tpu.memory_space<vmem>>, vector<1x32xf32>
    %84 = vector.shape_cast %83 : vector<1x32xf32> to vector<32xf32>
    %85 = vector.shape_cast %84 : vector<32xf32> to vector<1x32xf32>
    %86 = vector.broadcast %85 : vector<1x32xf32> to vector<8x32xf32>
    %87 = arith.addf %82, %86 : vector<8x32xf32>
    %88 = arith.addf %4, %87 : vector<8x32xf32>
    %c0_42 = arith.constant 0 : index
    %c0_43 = arith.constant 0 : index
    %89 = vector.load %arg8[%c0_42, %c0_43] : memref<1x32xf32, #tpu.memory_space<vmem>>, vector<1x32xf32>
    %90 = vector.shape_cast %89 : vector<1x32xf32> to vector<32xf32>
    %c0_44 = arith.constant 0 : index
    %c0_45 = arith.constant 0 : index
    %91 = vector.load %arg9[%c0_44, %c0_45] : memref<1x32xf32, #tpu.memory_space<vmem>>, vector<1x32xf32>
    %92 = vector.shape_cast %91 : vector<1x32xf32> to vector<32xf32>
    %cst_46 = arith.constant dense<0.000000e+00> : vector<8xf32>
    %93 = vector.multi_reduction <add>, %88, %cst_46 [1] : vector<8x32xf32> to vector<8xf32>
    %94 = vector.shape_cast %93 : vector<8xf32> to vector<8x1xf32>
    %cst_47 = arith.constant 3.200000e+01 : f32
    %95 = vector.broadcast %cst_47 : f32 to vector<8x1xf32>
    %96 = arith.divf %94, %95 : vector<8x1xf32>
    %97 = vector.broadcast %96 : vector<8x1xf32> to vector<8x32xf32>
    %98 = arith.subf %88, %97 : vector<8x32xf32>
    %99 = arith.mulf %98, %98 : vector<8x32xf32>
    %cst_48 = arith.constant dense<0.000000e+00> : vector<8xf32>
    %100 = vector.multi_reduction <add>, %99, %cst_48 [1] : vector<8x32xf32> to vector<8xf32>
    %101 = vector.shape_cast %100 : vector<8xf32> to vector<8x1xf32>
    %cst_49 = arith.constant 3.200000e+01 : f32
    %102 = vector.broadcast %cst_49 : f32 to vector<8x1xf32>
    %103 = arith.divf %101, %102 : vector<8x1xf32>
    %cst_50 = arith.constant 9.99999974E-6 : f32
    %104 = vector.broadcast %cst_50 : f32 to vector<8x1xf32>
    %105 = arith.addf %103, %104 : vector<8x1xf32>
    %106 = math.rsqrt %105 : vector<8x1xf32>
    %107 = vector.broadcast %106 : vector<8x1xf32> to vector<8x32xf32>
    %108 = arith.mulf %98, %107 : vector<8x32xf32>
    %109 = vector.shape_cast %90 : vector<32xf32> to vector<1x32xf32>
    %110 = vector.broadcast %109 : vector<1x32xf32> to vector<8x32xf32>
    %111 = arith.mulf %108, %110 : vector<8x32xf32>
    %112 = vector.shape_cast %92 : vector<32xf32> to vector<1x32xf32>
    %113 = vector.broadcast %112 : vector<1x32xf32> to vector<8x32xf32>
    %114 = arith.addf %111, %113 : vector<8x32xf32>
    %115 = arith.truncf %114 : vector<8x32xf32> to vector<8x32xbf16>
    %c0_51 = arith.constant 0 : index
    %c0_52 = arith.constant 0 : index
    %116 = vector.load %arg10[%c0_51, %c0_52] : memref<32x64xbf16, #tpu.memory_space<vmem>>, vector<32x64xbf16>
    %cst_53 = arith.constant dense<0.000000e+00> : vector<8x64xf32>
    %117 = tpu.matmul %115, %116, %cst_53 {dimension_numbers = #tpu.dot_dimension_numbers<[1], [0], [0], [1], [0, 0, 1, 1], [], []>} : vector<8x32xbf16>, vector<32x64xbf16>, vector<8x64xf32> -> vector<8x64xf32>
    %c0_54 = arith.constant 0 : index
    %c0_55 = arith.constant 0 : index
    %118 = vector.load %arg11[%c0_54, %c0_55] : memref<1x64xf32, #tpu.memory_space<vmem>>, vector<1x64xf32>
    %119 = vector.shape_cast %118 : vector<1x64xf32> to vector<64xf32>
    %120 = vector.shape_cast %119 : vector<64xf32> to vector<1x64xf32>
    %121 = vector.broadcast %120 : vector<1x64xf32> to vector<8x64xf32>
    %122 = arith.addf %117, %121 : vector<8x64xf32>
    %cst_56 = arith.constant 5.000000e-01 : f32
    %123 = vector.broadcast %cst_56 : f32 to vector<8x64xf32>
    %124 = arith.mulf %123, %122 : vector<8x64xf32>
    %cst_57 = arith.constant 0.707106769 : f32
    %125 = vector.broadcast %cst_57 : f32 to vector<8x64xf32>
    %126 = arith.mulf %122, %125 : vector<8x64xf32>
    %127 = math.erf %126 : vector<8x64xf32>
    %cst_58 = arith.constant 1.000000e+00 : f32
    %128 = vector.broadcast %cst_58 : f32 to vector<8x64xf32>
    %129 = arith.addf %128, %127 : vector<8x64xf32>
    %130 = arith.mulf %124, %129 : vector<8x64xf32>
    %131 = arith.truncf %130 : vector<8x64xf32> to vector<8x64xbf16>
    %c0_59 = arith.constant 0 : index
    %c0_60 = arith.constant 0 : index
    %132 = vector.load %arg12[%c0_59, %c0_60] : memref<64x32xbf16, #tpu.memory_space<vmem>>, vector<64x32xbf16>
    %cst_61 = arith.constant dense<0.000000e+00> : vector<8x32xf32>
    %133 = tpu.matmul %131, %132, %cst_61 {dimension_numbers = #tpu.dot_dimension_numbers<[1], [0], [0], [1], [0, 0, 1, 1], [], []>} : vector<8x64xbf16>, vector<64x32xbf16>, vector<8x32xf32> -> vector<8x32xf32>
    %c0_62 = arith.constant 0 : index
    %c0_63 = arith.constant 0 : index
    %134 = vector.load %arg13[%c0_62, %c0_63] : memref<1x32xf32, #tpu.memory_space<vmem>>, vector<1x32xf32>
    %135 = vector.shape_cast %134 : vector<1x32xf32> to vector<32xf32>
    %136 = vector.shape_cast %135 : vector<32xf32> to vector<1x32xf32>
    %137 = vector.broadcast %136 : vector<1x32xf32> to vector<8x32xf32>
    %138 = arith.addf %133, %137 : vector<8x32xf32>
    %139 = arith.addf %114, %138 : vector<8x32xf32>
    %c0_64 = arith.constant 0 : index
    %c0_65 = arith.constant 0 : index
    %140 = vector.load %arg14[%c0_64, %c0_65] : memref<1x32xf32, #tpu.memory_space<vmem>>, vector<1x32xf32>
    %141 = vector.shape_cast %140 : vector<1x32xf32> to vector<32xf32>
    %c0_66 = arith.constant 0 : index
    %c0_67 = arith.constant 0 : index
    %142 = vector.load %arg15[%c0_66, %c0_67] : memref<1x32xf32, #tpu.memory_space<vmem>>, vector<1x32xf32>
    %143 = vector.shape_cast %142 : vector<1x32xf32> to vector<32xf32>
    %cst_68 = arith.constant dense<0.000000e+00> : vector<8xf32>
    %144 = vector.multi_reduction <add>, %139, %cst_68 [1] : vector<8x32xf32> to vector<8xf32>
    %145 = vector.shape_cast %144 : vector<8xf32> to vector<8x1xf32>
    %cst_69 = arith.constant 3.200000e+01 : f32
    %146 = vector.broadcast %cst_69 : f32 to vector<8x1xf32>
    %147 = arith.divf %145, %146 : vector<8x1xf32>
    %148 = vector.broadcast %147 : vector<8x1xf32> to vector<8x32xf32>
    %149 = arith.subf %139, %148 : vector<8x32xf32>
    %150 = arith.mulf %149, %149 : vector<8x32xf32>
    %cst_70 = arith.constant dense<0.000000e+00> : vector<8xf32>
    %151 = vector.multi_reduction <add>, %150, %cst_70 [1] : vector<8x32xf32> to vector<8xf32>
    %152 = vector.shape_cast %151 : vector<8xf32> to vector<8x1xf32>
    %cst_71 = arith.constant 3.200000e+01 : f32
    %153 = vector.broadcast %cst_71 : f32 to vector<8x1xf32>
    %154 = arith.divf %152, %153 : vector<8x1xf32>
    %cst_72 = arith.constant 9.99999974E-6 : f32
    %155 = vector.broadcast %cst_72 : f32 to vector<8x1xf32>
    %156 = arith.addf %154, %155 : vector<8x1xf32>
    %157 = math.rsqrt %156 : vector<8x1xf32>
    %158 = vector.broadcast %157 : vector<8x1xf32> to vector<8x32xf32>
    %159 = arith.mulf %149, %158 : vector<8x32xf32>
    %160 = vector.shape_cast %141 : vector<32xf32> to vector<1x32xf32>
    %161 = vector.broadcast %160 : vector<1x32xf32> to vector<8x32xf32>
    %162 = arith.mulf %159, %161 : vector<8x32xf32>
    %163 = vector.shape_cast %143 : vector<32xf32> to vector<1x32xf32>
    %164 = vector.broadcast %163 : vector<1x32xf32> to vector<8x32xf32>
    %165 = arith.addf %162, %164 : vector<8x32xf32>
    %c0_73 = arith.constant 0 : index
    %c0_74 = arith.constant 0 : index
    %c0_75 = arith.constant 0 : index
    %166 = vector.load %arg16[%c0_73, %c0_74, %c0_75] : memref<1x8x32xf32, #tpu.memory_space<vmem>>, vector<1x8x32xf32>
    %167 = vector.shape_cast %166 : vector<1x8x32xf32> to vector<8x32xf32>
    %168 = vector.shape_cast %165 : vector<8x32xf32> to vector<1x8x32xf32>
    tpu.vector_store %arg16[%c0_73, %c0_74, %c0_75], %168 {strides = array<i32>} : memref<1x8x32xf32, #tpu.memory_space<vmem>>, vector<1x8x32xf32>,
    return
  }
  func.func @transform_0(%arg0: i32, %arg1: i32) -> (i32, i32, i32) {
    %c0_i32 = arith.constant 0 : i32
    %c0_i32_0 = arith.constant 0 : i32
    return %arg0, %arg1, %c0_i32 : i32, i32, i32
  }
  func.func @transform_1(%arg0: i32, %arg1: i32) -> (i32, i32, i32) {
    %c0_i32 = arith.constant 0 : i32
    %c0_i32_0 = arith.constant 0 : i32
    %c0_i32_1 = arith.constant 0 : i32
    return %arg0, %c0_i32, %c0_i32_0 : i32, i32, i32
  }
  func.func @transform_2(%arg0: i32, %arg1: i32) -> (i32, i32) {
    %c0_i32 = arith.constant 0 : i32
    %c0_i32_0 = arith.constant 0 : i32
    %c0_i32_1 = arith.constant 0 : i32
    return %c0_i32, %c0_i32_0 : i32, i32
  }
  func.func @transform_3(%arg0: i32, %arg1: i32) -> (i32, i32) {
    %c0_i32 = arith.constant 0 : i32
    %c0_i32_0 = arith.constant 0 : i32
    %c0_i32_1 = arith.constant 0 : i32
    return %c0_i32, %c0_i32_0 : i32, i32
  }
  func.func @transform_4(%arg0: i32, %arg1: i32) -> (i32, i32) {
    %c0_i32 = arith.constant 0 : i32
    %c0_i32_0 = arith.constant 0 : i32
    %c0_i32_1 = arith.constant 0 : i32
    return %c0_i32, %c0_i32_0 : i32, i32
  }
  func.func @transform_5(%arg0: i32, %arg1: i32) -> (i32, i32) {
    %c0_i32 = arith.constant 0 : i32
    %c0_i32_0 = arith.constant 0 : i32
    %c0_i32_1 = arith.constant 0 : i32
    return %c0_i32, %c0_i32_0 : i32, i32
  }
  func.func @transform_6(%arg0: i32, %arg1: i32) -> (i32, i32) {
    %c0_i32 = arith.constant 0 : i32
    %c0_i32_0 = arith.constant 0 : i32
    %c0_i32_1 = arith.constant 0 : i32
    return %c0_i32, %c0_i32_0 : i32, i32
  }
  func.func @transform_7(%arg0: i32, %arg1: i32) -> (i32, i32) {
    %c0_i32 = arith.constant 0 : i32
    %c0_i32_0 = arith.constant 0 : i32
    %c0_i32_1 = arith.constant 0 : i32
    return %c0_i32, %c0_i32_0 : i32, i32
  }
  func.func @transform_8(%arg0: i32, %arg1: i32) -> (i32, i32) {
    %c0_i32 = arith.constant 0 : i32
    %c0_i32_0 = arith.constant 0 : i32
    %c0_i32_1 = arith.constant 0 : i32
    return %c0_i32, %c0_i32_0 : i32, i32
  }
  func.func @transform_9(%arg0: i32, %arg1: i32) -> (i32, i32) {
    %c0_i32 = arith.constant 0 : i32
    %c0_i32_0 = arith.constant 0 : i32
    %c0_i32_1 = arith.constant 0 : i32
    return %c0_i32, %c0_i32_0 : i32, i32
  }
  func.func @transform_10(%arg0: i32, %arg1: i32) -> (i32, i32) {
    %c0_i32 = arith.constant 0 : i32
    %c0_i32_0 = arith.constant 0 : i32
    %c0_i32_1 = arith.constant 0 : i32
    return %c0_i32, %c0_i32_0 : i32, i32
  }
  func.func @transform_11(%arg0: i32, %arg1: i32) -> (i32, i32) {
    %c0_i32 = arith.constant 0 : i32
    %c0_i32_0 = arith.constant 0 : i32
    %c0_i32_1 = arith.constant 0 : i32
    return %c0_i32, %c0_i32_0 : i32, i32
  }
  func.func @transform_12(%arg0: i32, %arg1: i32) -> (i32, i32) {
    %c0_i32 = arith.constant 0 : i32
    %c0_i32_0 = arith.constant 0 : i32
    %c0_i32_1 = arith.constant 0 : i32
    return %c0_i32, %c0_i32_0 : i32, i32
  }
  func.func @transform_13(%arg0: i32, %arg1: i32) -> (i32, i32) {
    %c0_i32 = arith.constant 0 : i32
    %c0_i32_0 = arith.constant 0 : i32
    %c0_i32_1 = arith.constant 0 : i32
    return %c0_i32, %c0_i32_0 : i32, i32
  }
  func.func @transform_14(%arg0: i32, %arg1: i32) -> (i32, i32, i32) {
    %c0_i32 = arith.constant 0 : i32
    %c0_i32_0 = arith.constant 0 : i32
    return %arg0, %arg1, %c0_i32 : i32, i32, i32
  }
}

</mosaic_0001>

<bundles_post_ra>
// kernel: tpu_custom_call.1
= control target key start
LH: loop header
LB: loop body
LE: loop exit
PB: predicated region body
PF: predicated region fallthrough
CT: control target
= control target key end

     0   :  { %s2385_s0 = inlined_call_operand.vmem [shape: f32[2,8,32], index: 0, kind: input, shape index: {}]   ;;  %s2386_s1 = inlined_call_operand.vmem [shape: f32[2,8,32], index: 1, kind: input, shape index: {}]   ;;  %s2387_s2 = inlined_call_operand.vmem [shape: bf16[32,96], index: 2, kind: input, shape index: {}]   ;;  %s2388_s3 = inlined_call_operand.vmem [shape: f32[1,96], index: 3, kind: input, shape index: {}]   ;;  %s2389_s4 = inlined_call_operand.hbm [shape: bf16[32,32], index: 4, kind: input, shape index: {}]   ;;  %s2390_s5 = inlined_call_operand.vmem [shape: f32[1,32], index: 5, kind: input, shape index: {}]   ;;  %s2391_s6 = inlined_call_operand.vmem [shape: f32[1,32], index: 6, kind: input, shape index: {}]   ;;  %s2392_s7 = inlined_call_operand.vmem [shape: f32[1,32], index: 7, kind: input, shape index: {}]   ;;  %s2393_s8 = inlined_call_operand.hbm [shape: bf16[32,64], index: 8, kind: input, shape index: {}]   ;;  %s2394_s9 = inlined_call_operand.vmem [shape: f32[1,64], index: 9, kind: input, shape index: {}]   ;;  %s2395_s10 = inlined_call_operand.vmem [shape: bf16[64,32], index: 10, kind: input, shape index: {}]   ;;  %s2396_s11 = inlined_call_operand.vmem [shape: f32[1,32], index: 11, kind: input, shape index: {}]   ;;  %s2397_s12 = inlined_call_operand.vmem [shape: f32[1,32], index: 12, kind: input, shape index: {}]   ;;  %s2398_s13 = inlined_call_operand.vmem [shape: f32[1,32], index: 13, kind: input, shape index: {}]   ;;  %s2399_s14 = inlined_call_operand.hbm [shape: f32[2,8,32], index: 14, kind: output, shape index: {}]  }
   0x1   :  { %2412 = sst [smem:[#allocation20_spill]] %s2397_s12 }
   0x2   :  { %2413 = sst [smem:[#allocation21_spill]] %s2398_s13 }
   0x3   :  { %2414 = sst [smem:[#allocation22_spill]] %s2399_s14 }
   0x4   :  { %19 = vsyncpa [#allocation5], 0 }
   0x5   :  { %20 = vsyncpa [#allocation8], 0 }
   0x6   :  { %21 = vsyncpa [#allocation6], 0 }
   0x7   :  { %23 = vsyncpa [#allocation6 + $0x1], 0  ;;  %s2055_s29 = smov 0   ;;  %s2057_s30 = smov 0  }
   0x8   :  { %s2059_s15 = smov 0   ;;  %s2061_s16 = smov 0  }
   0x9   :  { %s2063_s17 = smov 0   ;;  %s2065_s18 = smov 0  }
   0xa LB: > { %2415 = sst [smem:[#allocation13_spill]] %s1937_s29  ;;  %s1515_s19 = sadd.s32 4294967295, %s1957_s18   ;;  %s1957_s18 = sphi %s2065_s18, %s29_s18   ;;  %s1953_s17 = sphi %s2063_s17, %s2443_s17   ;;  %s1949_s16 = sphi %s2061_s16, %s2439_s16   ;;  %s1945_s15 = sphi %s2059_s15, %s2438_s15   ;;  %s1941_s30 = sphi %s2057_s30, %s2442_s30   ;;  %s1937_s29 = sphi %s2055_s29, %s2441_s29  }
   0xb   : > { %2416 = sst [smem:[#allocation14_spill]] %s1945_s15  ;;  %s1516_s20 = sadd.s32 4294967294, %s1957_s18  }
   0xc   : > { %2417 = sst [smem:[#allocation15_spill]] %s1953_s17  ;;  %s41_s21 = sadd.s32 1, %s1953_s17 }
   0xd   : > { %2418 = sst [smem:[#allocation16_spill]] %s1957_s18  ;;  %s356_s22 = sadd.s32 1, %s1945_s15 }
   0xe   : > { %p43_p0 = scmp.ge.s32.totalorder %s41_s21, 2  ;;  %p366_p1 = scmp.ne.s32.totalorder %s1945_s15, %s1941_s30 }
   0xf   : > { %p367_p2 = scmp.eq.s32.totalorder %s1515_s19, 1  ;;  %p372_p3 = scmp.ne.s32.totalorder %s1941_s30, %s1937_s29 }
  0x10   : > { %s2445_s21 = smov (%p43_p0, %s41_s21), 0  ;;  %p373_p5 = scmp.eq.s32.totalorder %s1516_s20, 1 }
  0x11   : > { %2419 = sst [smem:[#allocation17_spill]] %s2445_s21  ;;  %p2095_p4 = por %p367_p2, %p366_p1 }
  0x12   : > { %s351_s24 = ssub.s32 %s1953_s17, %s2445_s21  ;;  %p1517_p6 = scmp.ge.s32.totalorder %s1957_s18, 1 }
  0x13   : > { %s2420_s23 = scalar_select %p2095_p4, 1, 0 }
  0x14   : > { %p354_p7 = scmp.eq.s32.totalorder %s351_s24, 0  ;;  %p2102_p8 = por %p373_p5, %p372_p3 }
  0x15   : > { %p380_p9 = scmp.lt.s32.totalorder %s1957_s18, 3  ;;  %p2114_p11 = scmp.eq.s32.totalorder %s1515_s19, 0 }
  0x16   : > { %s2421_s25 = scalar_select %p2102_p8, 1, 0 }
  0x17   : > { %s2108_s26 = scalar_select %p354_p7, %s1945_s15, %s356_s22  }
  0x18   : > { %2422 = sst [smem:[#allocation18_spill]] %s2421_s25  ;;  %p2110_p10 = pnand %p1517_p6, %p380_p9 }
  0x19   : > { %2423 = sst [smem:[#allocation19_spill]] %s2108_s26  ;;  %s1959_s20 = smov [#allocation4]  }
  0x1a   : > { %s2424_s27 = scalar_select %p2110_p10, 1, 0 }
  0x1b   : > { %s2425_s28 = scalar_select %p2114_p11, 1, 0 }
  0x1c   : > { %p1692_p12 = pneg %p2110_p10  ;;  %s398_s24 = sshll.u32 %s1959_s20, 4  ;;  %s399_s24 = int_to_ptr.vmem [resolvable:$true] %s398_s24 }
  0x1d   : > { %s1960_s22 = smov [#allocation7]   ;;  %s1815_s15 = scalar_lea.hbm %s2389_s4, 256 }
  0x1e   : > { %p2122_p13 = pnand %p2114_p11, %p1692_p12  ;;  %s420_s17 = sshll.u32 %s1960_s22, 4  ;;  %s2126_s17 = int_to_ptr.vmem [resolvable:$true] %s420_s17 }
  0x1f   : > { %p1816_p0 = scmp.ne.s32.totalorder %s2389_s4, %s1815_s15  ;;  %p1822_p5 = scmp.lt.u32.totalorder %s1815_s15, %s2389_s4 }
  0x20   : > { %p1817_p1 = pneg %p2122_p13 }
  0x22   : > { %p1818_p2 = pnand %p1817_p1, %p1816_p0 }
  0x24   : > { %p1819_p3 = pneg %p1818_p2 }
  0x26   : > { %p1824_p6 = pnand %p1822_p5, %p1819_p3 }
  0x28   : > { %1827 = shalt.err (!%p1824_p6)
}
  0x29   : > { %s1828_s22 = scalar_lea.vmem %s399_s24, 256  ;;  %p1836_p8 = scmp.lt.s32.totalorder %s399_s24, %s399_s24 }
  0x2a   : > { %p1829_p7 = scmp.ne.s32.totalorder %s399_s24, %s1828_s22  ;;  %p1837_p4 = scmp.lt.s32.totalorder %s1828_s22, %s1828_s22 }
  0x2c   : > { %p1831_p9 = pnand %p1829_p7, %p1817_p1  ;;  %p1838_p11 = por %p1837_p4, %p1836_p8 }
  0x2e   : > { %p1832_p12 = pneg %p1831_p9 }
  0x30   : > { %p1839_p10 = pnand %p1838_p11, %p1832_p12 }
  0x32   : > { %1842 = shalt.err (!%p1839_p10)
}
  0x33   : > { %s1961_s29 = smov 64   ;;  %s1962_s25 = smov 4  }
  0x34   : > { %1695 = dma.hbm_to_vmem [thread:$0]  (!%p2122_p13), %s2389_s4, 256, %s399_s24, [#allocation5], %s1961_s29, %s1961_s29, %s1962_s25  }
  0x35   : > { %s1843_s20 = scalar_lea.hbm %s2393_s8, 256 }
  0x36   : > { %p1844_p0 = scmp.ne.s32.totalorder %s2393_s8, %s1843_s20  ;;  %p1850_p10 = scmp.lt.u32.totalorder %s1843_s20, %s2393_s8 }
  0x38   : > { %p1846_p4 = pnand %p1844_p0, %p1817_p1 }
  0x3a   : > { %p1847_p8 = pneg %p1846_p4 }
  0x3c   : > { %p1852_p11 = pnand %p1850_p10, %p1847_p8 }
  0x3e   : > { %1855 = shalt.err (!%p1852_p11)
}
  0x3f   : > { %s1856_s24 = scalar_lea.vmem %s2126_s17, 256  ;;  %p1864_p6 = scmp.lt.s32.totalorder %s2126_s17, %s2126_s17 }
  0x40   : > { %p1857_p2 = scmp.ne.s32.totalorder %s2126_s17, %s1856_s24  ;;  %p1865_p7 = scmp.lt.s32.totalorder %s1856_s24, %s1856_s24 }
  0x42   : > { %p1859_p3 = pnand %p1857_p2, %p1817_p1  ;;  %p1866_p9 = por %p1865_p7, %p1864_p6 }
  0x44   : > { %p1860_p5 = pneg %p1859_p3 }
  0x46   : > { %p1867_p12 = pnand %p1866_p9, %p1860_p5 }
  0x48   : > { %1870 = shalt.err (!%p1867_p12)
}
  0x49   : > { %1698 = dma.hbm_to_vmem [thread:$0]  (!%p2122_p13), %s2393_s8, 256, %s2126_s17, [#allocation8], %s1961_s29, %s1961_s29, %s1962_s25  }
  0x4a   : > { %p2427_p0 = scmp.ne.s32.totalorder %s2424_s27, 0 }
  0x4b   : > { %p2428_p4 = scmp.ne.s32.totalorder (!%p2427_p0), %s2425_s28, 0 }
  0x4c   : > { %468 = sbr.rel (%p2427_p0) target bundleno = 2678 (0xa76), region = 76 }
  0x53   : > { %1924 = dma.done.wait (%p2428_p4), [#allocation5], 256  }
  0x54   : > { %1926 = vsyncadd (%p2428_p4), [#allocation5], 4294967040 }
  0x55   : > { %1928 = dma.done.wait (%p2428_p4), [#allocation8], 256  }
  0x56   : > { %1930 = vsyncadd (%p2428_p4), [#allocation8], 4294967040  ;;  %p524_p1 = scmp.lt.s32.totalorder %s1949_s16, 1  ;;  %v1963_v0 = vmov 0.0   ;;  %vm1964_vm0 = vmmov 0   ;;  %v1776_v1 = vld [vmem:[%s2387_s2] sm:$0xff]  }
  0x57   : > { %1598 = vmatprep.subr.bf16.mxu0 %v1963_v0  ;;  %1602 = vmatprep.mubr.msk.bf16.mxu0 %vm1964_vm0, %v1963_v0  ;;  %v1777_v2 = vld [vmem:[%s2387_s2 + $0x8] sm:$0xff]   ;;  %vm565_vm1 = vcmask 261120   ;;  %v1527_v5 = vld [vmem:[%s2388_s3] ss:$0 sm:$0xff]  ;;  %vm610_vm2 = vcmask 781312   ;;  %s1965_s20 = smov 120  }
  0x58   : > { %s2190_s14 = scalar_select %p524_p1, %s1949_s16, 1  ;;  %1606 = vmatprep.subr.bf16.mxu1 %v1963_v0  ;;  %1608 = vmatprep.mubr.msk.bf16.mxu1 %vm1964_vm0, %v1963_v0  ;;  %vm625_vm3 = vcmask 64512   ;;  %vm689_vm4 = vcmask 1043456   ;;  %vm856_vm5 = vcmask 130112   ;;  %vm980_vm6 = vcmask 195712  }
  0x59   : > { %1599 = vmatpush3.bf16.msra.mxu0 %v1776_v1  ;;  %s1966_s22 = smov 96   ;;  %s1967_s24 = smov 80   ;;  %vm1104_vm7 = vcmask 261312   ;;  %vm1318_vm8 = vcmask 523264  }
  0x5a   : > { %s1525_s17 = sshll.u32 %s2190_s14, 3  ;;  %1600 = vmatprep.subr.bf16.mxu0 %v1963_v0  ;;  %s1968_s12 = smov 88  }
  0x5b   : > { %s534_s28 = scalar_lea.vmem %s2386_s1, %s1525_s17  ;;  %s1969_s13 = smov 72  }
  0x5c   : > { %v540_v3 = vld [vmem:[%s534_s28] sm:$0xff]  ;;  %s1970_s21 = smov 112   ;;  %s1971_s27 = smov 104  }
  0x5d   : > { %v541_v4 = vpack.c.bf16 %v540_v3, %v540_v3  ;;  %1601 = vmatpush3.bf16.msra.mxu0 %v1777_v2  ;;  %s1972_s28 = smov 56   ;;  %s1973_s29 = smov 64  }
  0x5e   : > { %1612 = vmatprep.subr.bf16.mxu0 %v1963_v0  ;;  %s1974_s25 = smov 40   ;;  %s1975_s15 = smov 48  }
  0x5f   : > { %s1976_s18 = smov 8   ;;  %s1977_s26 = smov 16  }
  0x60   : > { %1603 = vmatmul.mubr.msk.bf16.vlgmr.msra.gmra.mrb[0].mxu0 %vm565_vm1, %v541_v4  ;;  %s1978_s19 = smov 24   ;;  %s521_s14 = sand.u32 1, %s1941_s30  }
  0x61   : > { %1614 = vmatprep.mubr.msk.bf16.mxu0 %vm1964_vm0, %v1963_v0  ;;  %p2432_p8 = scmp.ne.s32.totalorder %s2420_s23, 0 }
 0x133   : > { %v603_v6 = vpop.f32.mrb[0].mxu0 }
 0x134   : > { %v604_v7 = vadd.f32 %v1527_v5, %v603_v6  ;;  %v1604_v8 = vpop.f32.mrb[1].mxu0 }
 0x135   : > { %v606_v9 = vpop.f32.mrb[2].mxu0 }
 0x136   : > { %v609_v10 = vpack.c.bf16 %v604_v7, %v604_v7  ;;  %v1605_v11 = vpop.f32.mrb[3].mxu0 }
 0x138   : > { %611 = vst.msk [vmem:[#allocation2] sm:$0xf] %vm610_vm2, %v609_v10 }
 0x13f   : > { %v1778_v12 = vld [vmem:[#allocation2] ss:$0 sps:$4 sm:$0xff]  }
 0x140   : > { %v2215_v13 = vld [vmem:[#allocation2] ss:$0 sps:$4 sm:$0xff]   ;;  %739 = vrot.lane.b32.xlu1 %v1778_v12, %s1965_s20 }
 0x141   : > { %623 = vrot.lane.b32.xlu0 %v2215_v13, %s1966_s22  ;;  %v2218_v14 = vld [vmem:[#allocation2] ss:$0 sps:$4 sm:$0xff]  }
 0x142   : > { %v2220_v15 = vld [vmem:[#allocation2] ss:$0 sps:$4 sm:$0xff]  }
 0x143   : > { %v2224_v16 = vld [vmem:[#allocation2] ss:$0 sps:$4 sm:$0xff]  }
 0x144   : > { %868 = vrot.lane.b32.xlu1 %v2218_v14, %s1967_s24  ;;  %v1783_v17 = vld [vmem:[#allocation2] ss:$0 sps:$4 sm:$0xff]   ;;  %s530_s24 = scalar_lea.vmem %s2385_s0, %s1525_s17  ;;  %s1524_s17 = sshll.u32 %s521_s14, 3 }
 0x145   : > { %744 = vrot.lane.b32.xlu0 %v2220_v15, %s1968_s12  ;;  %v1784_v18 = vld [vmem:[#allocation2] ss:$0 sps:$4 sm:$0xff]  }
 0x146   : > { %v618_v23 = vld [vmem:[#allocation2] sm:$0xf] }
 0x148   : > { %992 = vrot.lane.b32.xlu1 %v2224_v16, %s1969_s13  ;;  %s1394_s13 = scalar_lea.sflag [#allocation6], %s521_s14 }
 0x149   : > { %863 = vrot.lane.b32.xlu0 %v1783_v17, %s1970_s21 }
 0x14d   : > { %987 = vrot.lane.b32.xlu0 %v1784_v18, %s1971_s27 }
 0x1b2   : > { %v740_v22 = vpop.permute.xlu1 %739 }
 0x1b3   : > { %v624_v19 = vpop.permute.xlu0 %623 }
 0x1b4   : > { %v630_v20 = vsel %vm625_vm3, %v624_v19, 0 }
 0x1b5   : > { %1607 = vmatpush3.bf16.xpose.msra.mxu1 %v630_v20 }
 0x1b6   : > { %1618 = vmatprep.subr.bf16.mxu1 %v1963_v0  ;;  %v869_v25 = vpop.permute.xlu1 %868 }
 0x1b7   : > { %v745_v21 = vpop.permute.xlu0 %744  ;;  %v874_v26 = vsel %vm625_vm3, %v869_v25, 0 }
 0x1b8   : > { %v750_v24 = vsel %vm625_vm3, %v745_v21, 0 }
 0x1ba   : > { %v993_v27 = vpop.permute.xlu1 %992 }
 0x1bb   : > { %v864_v28 = vpop.permute.xlu0 %863  ;;  %v998_v29 = vsel %vm625_vm3, %v993_v27, 0 }
 0x1bc   : > { %1609 = vmatmul.mubr.msk.bf16.vlgmr.msra.gmra.mrb[0].mxu1 %vm625_vm3, %v618_v23 }
 0x1bd   : > { %1619 = vmatpush3.bf16.xpose.msra.mxu1 %v750_v24  ;;  %1620 = vmatprep.mubr.msk.bf16.mxu1 %vm1964_vm0, %v1963_v0 }
 0x1be   : > { %1630 = vmatprep.subr.bf16.mxu1 %v1963_v0 }
 0x1bf   : > { %v988_v30 = vpop.permute.xlu0 %987 }
 0x1c4   : > { %1621 = vmatmul.mubr.msk.bf16.vlgmr.msra.gmra.mrb[4].mxu1 %vm625_vm3, %v740_v22 }
 0x1c5   : > { %1631 = vmatpush3.bf16.xpose.msra.mxu1 %v874_v26  ;;  %1632 = vmatprep.mubr.msk.bf16.mxu1 %vm1964_vm0, %v1963_v0 }
 0x1c6   : > { %1642 = vmatprep.subr.bf16.mxu1 %v1963_v0 }
 0x1cc   : > { %1633 = vmatmul.mubr.msk.bf16.vlgmr.msra.gmra.mrb[8].mxu1 %vm625_vm3, %v864_v28 }
 0x1cd   : > { %1643 = vmatpush3.bf16.xpose.msra.mxu1 %v998_v29  ;;  %1644 = vmatprep.mubr.msk.bf16.mxu1 %vm1964_vm0, %v1963_v0 }
 0x1ce   : > { %1654 = vmatprep.subr.bf16.mxu1 %v1963_v0 }
 0x1d4   : > { %1645 = vmatmul.mubr.msk.bf16.vlgmr.msra.gmra.mrb[12].mxu1 %vm625_vm3, %v988_v30 }
 0x1d5   : > { %1658 = vmatprep.mubr.msk.bf16.mxu1 %vm1964_vm0, %v1963_v0 }
 0x28f   : > { %v666_v31 = vpop.f32.mrb[0].mxu1 }
 0x290   : > { %v1610_v32 = vpop.f32.mrb[1].mxu1  ;;  %v672_v33 = vsel %vm625_vm3, %v666_v31, -inf }
 0x291   : > { %673 = vmax.xlane.f32.xlu1 %v672_v33  ;;  %v669_v34 = vpop.f32.mrb[2].mxu1 }
 0x292   : > { %v1611_v35 = vpop.f32.mrb[3].mxu1 }
 0x297   : > { %v786_v36 = vpop.f32.mrb[4].mxu1 }
 0x298   : > { %v1622_v37 = vpop.f32.mrb[5].mxu1  ;;  %v792_v38 = vsel %vm625_vm3, %v786_v36, -inf }
 0x299   : > { %793 = vmax.xlane.f32.xlu0 %v792_v38  ;;  %v789_v39 = vpop.f32.mrb[6].mxu1 }
 0x29a   : > { %v1623_v40 = vpop.f32.mrb[7].mxu1 }
 0x29b   : > { %v1785_v40 = vld [vmem:[#allocation4] sm:$0xff]  }
 0x29c   : > { %1655 = vmatpush3.bf16.msra.mxu1 %v1785_v40 }
 0x29d   : > { %1656 = vmatprep.subr.bf16.mxu1 %v1963_v0 }
 0x29f   : > { %v910_v41 = vpop.f32.mrb[8].mxu1 }
 0x2a0   : > { %v1634_v42 = vpop.f32.mrb[9].mxu1  ;;  %v916_v43 = vsel %vm625_vm3, %v910_v41, -inf }
 0x2a1   : > { %917 = vmax.xlane.f32.xlu0 %v916_v43  ;;  %v913_v44 = vpop.f32.mrb[10].mxu1 }
 0x2a2   : > { %v1635_v45 = vpop.f32.mrb[11].mxu1 }
 0x2a7   : > { %v1034_v46 = vpop.f32.mrb[12].mxu1 }
 0x2a8   : > { %v1646_v47 = vpop.f32.mrb[13].mxu1  ;;  %v1040_v48 = vsel %vm625_vm3, %v1034_v46, -inf }
 0x2a9   : > { %1041 = vmax.xlane.f32.xlu1 %v1040_v48  ;;  %v1037_v49 = vpop.f32.mrb[14].mxu1 }
 0x2aa   : > { %v1647_v50 = vpop.f32.mrb[15].mxu1 }
 0x31e   : > { %v674_v51 = vpop.xlane.xlu1 %673 }
 0x31f   : > { %v675_v52 = vsub.f32 %v666_v31, %v674_v51 }
 0x321   : > { %v676_v53 = vmul.f32 1.442695, %v675_v52 }
 0x323   : > { %1793 = vpow2.f32 %v676_v53 }
 0x326   : > { %v794_v54 = vpop.xlane.xlu0 %793 }
 0x327   : > { %v795_v55 = vsub.f32 %v786_v36, %v794_v54 }
 0x329   : > { %v796_v56 = vmul.f32 1.442695, %v795_v55  ;;  %v1546_v55 = vld [vmem:[%s2390_s5] ss:$0 sm:$0xff] }
 0x32b   : > { %1795 = vpow2.f32 %v796_v56 }
 0x32d   : > { %v1794_v57 = vpop.eup %1793 }
 0x32e   : > { %v918_v58 = vpop.xlane.xlu0 %917  ;;  %v678_v59 = vsel %vm625_vm3, %v1794_v57, 0.0 }
 0x32f   : > { %v919_v60 = vsub.f32 %v910_v41, %v918_v58  ;;  %679 = vadd.xlane.f32.xlu0 %v678_v59  ;;  %v1786_v41 = vld [vmem:[#allocation4 + $0x8] sm:$0xff]  }
 0x330   : > { %1657 = vmatpush3.bf16.msra.mxu1 %v1786_v41 }
 0x331   : > { %v920_v61 = vmul.f32 1.442695, %v919_v60  ;;  %1670 = vmatprep.subr.bf16.mxu1 %v1963_v0 }
 0x333   : > { %1797 = vpow2.f32 %v920_v61 }
 0x335   : > { %v1796_v62 = vpop.eup %1795 }
 0x336   : > { %v798_v63 = vsel %vm625_vm3, %v1796_v62, 0.0  ;;  %v1042_v3 = vpop.xlane.xlu1 %1041 }
 0x337   : > { %799 = vadd.xlane.f32.xlu1 %v798_v63  ;;  %v1043_v4 = vsub.f32 %v1034_v46, %v1042_v3 }
 0x339   : > { %v1044_v5 = vmul.f32 1.442695, %v1043_v4 }
 0x33b   : > { %1799 = vpow2.f32 %v1044_v5 }
 0x33d   : > { %v1798_v1 = vpop.eup %1797 }
 0x33e   : > { %v922_v2 = vsel %vm625_vm3, %v1798_v1, 0.0 }
 0x33f   : > { %923 = vadd.xlane.f32.xlu0 %v922_v2 }
 0x345   : > { %v1800_v6 = vpop.eup %1799 }
 0x346   : > { %v1046_v7 = vsel %vm625_vm3, %v1800_v6, 0.0 }
 0x348   : > { %804 = vrot.lane.b32.xlu1 %v2220_v15, %s1972_s28  ;;  %s2429_s28 = sld [smem:[#allocation20_spill]] }
 0x355   : > { %684 = vrot.lane.b32.xlu0 %v2215_v13, %s1973_s29 }
 0x359   : > { %1052 = vrot.lane.b32.xlu0 %v2224_v16, %s1974_s25 }
 0x36c   : > { %1047 = vadd.xlane.f32.xlu1 %v1046_v7  ;;  %v1788_v7 = vld [vmem:[#allocation7 + $0x8] sm:$0xff]  }
 0x37d   : > { %928 = vrot.lane.b32.xlu1 %v2218_v14, %s1975_s15  ;;  %s2430_s15 = sld [smem:[#allocation21_spill]] }
 0x3bc   : > { %v680_v8 = vpop.xlane.xlu0 %679 }
 0x3bd   : > { %1801 = vrcp.f32 %v680_v8 }
 0x3c4   : > { %v800_v9 = vpop.xlane.xlu1 %799 }
 0x3c5   : > { %1803 = vrcp.f32 %v800_v9 }
 0x3c7   : > { %v1802_v10 = vpop.eup %1801 }
 0x3c8   : > { %v682_v12 = vmul.f32 %v1802_v10, %v1794_v57  ;;  %v805_v16 = vpop.permute.xlu1 %804  ;;  %v612_v57 = vld [vmem:[%s530_s24] sm:$0xff]  ;;  %s2431_s24 = sld [smem:[#allocation22_spill]] }
 0x3c9   : > { %v810_v19 = vsel %vm689_vm4, %v805_v16, 0 }
 0x3ca   : > { %v683_v17 = vpack.c.bf16 %v682_v12, %v682_v12  ;;  %v1550_v12 = vld [vmem:[%s2391_s6] ss:$0 sm:$0xff] }
 0x3cc   : > { %v924_v11 = vpop.xlane.xlu0 %923 }
 0x3cd   : > { %1805 = vrcp.f32 %v924_v11 }
 0x3cf   : > { %v1804_v18 = vpop.eup %1803 }
 0x3d0   : > { %v685_v13 = vpop.permute.xlu0 %684  ;;  %v802_v14 = vmul.f32 %v1804_v18, %v1796_v62 }
 0x3d1   : > { %v691_v15 = vsel %vm689_vm4, %v685_v13, 0 }
 0x3d2   : > { %1613 = vmatpush3.bf16.msra.mxu0 %v691_v15  ;;  %v803_v20 = vpack.c.bf16 %v802_v14, %v802_v14  ;;  %v1551_v15 = vld [vmem:[%s2392_s7] ss:$0 sm:$0xff]  ;;  %v1790_v14 = vld [vmem:[%s2395_s10 + $0x8] sm:$0xff]  }
 0x3d3   : > { %1624 = vmatprep.subr.bf16.mxu0 %v1963_v0 }
 0x3d4   : > { %v1053_v26 = vpop.permute.xlu0 %1052 }
 0x3d5   : > { %1615 = vmatmul.mubr.msk.bf16.vlgmr.msra.gmra.mrb[4].mxu0 %vm625_vm3, %v683_v17  ;;  %v1058_v28 = vsel %vm689_vm4, %v1053_v26, 0 }
 0x3d6   : > { %1625 = vmatpush3.bf16.msra.mxu0 %v810_v19  ;;  %1626 = vmatprep.mubr.msk.bf16.mxu0 %vm1964_vm0, %v1963_v0  ;;  %v1789_v19 = vld [vmem:[%s2395_s10] sm:$0xff]  }
 0x3d7   : > { %1636 = vmatprep.subr.bf16.mxu0 %v1963_v0  ;;  %v1806_v21 = vpop.eup %1805 }
 0x3d8   : > { %v926_v23 = vmul.f32 %v1806_v21, %v1798_v1  ;;  %v1792_v21 = vld [vmem:[%s2395_s10 + $0x18] sm:$0xff]  }
 0x3da   : > { %v927_v27 = vpack.c.bf16 %v926_v23, %v926_v23 }
 0x3dd   : > { %1627 = vmatmul.mubr.msk.bf16.vlgmr.msra.gmra.mrb[8].mxu0 %vm625_vm3, %v803_v20  ;;  %v1791_v20 = vld [vmem:[%s2395_s10 + $0x10] sm:$0xff]  }
 0x3de   : > { %1638 = vmatprep.mubr.msk.bf16.mxu0 %vm1964_vm0, %v1963_v0 }
 0x3f9   : > { %v1048_v22 = vpop.xlane.xlu1 %1047 }
 0x3fa   : > { %1807 = vrcp.f32 %v1048_v22  ;;  %v1552_v22 = vld [vmem:[%s2394_s9] ss:$0 sm:$0xff] }
 0x3fd   : > { %v929_v24 = vpop.permute.xlu1 %928 }
 0x3fe   : > { %v934_v25 = vsel %vm689_vm4, %v929_v24, 0 }
 0x3ff   : > { %1637 = vmatpush3.bf16.msra.mxu0 %v934_v25 }
 0x400   : > { %1648 = vmatprep.subr.bf16.mxu0 %v1963_v0 }
 0x402   : > { %1639 = vmatmul.mubr.msk.bf16.vlgmr.msra.gmra.mrb[12].mxu0 %vm625_vm3, %v927_v27 }
 0x403   : > { %1649 = vmatpush3.bf16.msra.mxu0 %v1058_v28  ;;  %1650 = vmatprep.mubr.msk.bf16.mxu0 %vm1964_vm0, %v1963_v0 }
 0x404   : > { %v1808_v29 = vpop.eup %1807  ;;  %1662 = vmatprep.subr.bf16.mxu0 %v1963_v0 }
 0x405   : > { %v1050_v30 = vmul.f32 %v1808_v29, %v1800_v6  ;;  %v1787_v6 = vld [vmem:[#allocation7] sm:$0xff]  }
 0x407   : > { %v1051_v31 = vpack.c.bf16 %v1050_v30, %v1050_v30 }
 0x40a   : > { %1651 = vmatmul.mubr.msk.bf16.vlgmr.msra.gmra.mrb[16].mxu0 %vm625_vm3, %v1051_v31 }
 0x40b   : > { %1666 = vmatprep.mubr.msk.bf16.mxu0 %vm1964_vm0, %v1963_v0  ;;  %1663 = vmatpush3.bf16.msra.mxu0 %v1787_v6 }
 0x40c   : > { %1664 = vmatprep.subr.bf16.mxu0 %v1963_v0 }
 0x40f   : > { %1665 = vmatpush3.bf16.msra.mxu0 %v1788_v7 }
 0x4a8   : > { %v727_v32 = vpop.f32.mrb[4].mxu0 }
 0x4a9   : > { %733 = vst.msk [vmem:[#allocation3] sm:$0xff] %vm625_vm3, %v727_v32  ;;  %v1616_v33 = vpop.f32.mrb[5].mxu0 }
 0x4aa   : > { %v730_v34 = vpop.f32.mrb[6].mxu0  ;;  %v1556_v33 = vld [vmem:[%s2396_s11] ss:$0 sm:$0xff] }
 0x4ab   : > { %v1617_v35 = vpop.f32.mrb[7].mxu0 }
 0x4b0   : > { %v846_v36 = vpop.f32.mrb[8].mxu0 }
 0x4b1   : > { %853 = vrot.lane.b32.xlu1 %v846_v36, %s1976_s18  ;;  %v1628_v37 = vpop.f32.mrb[9].mxu0  ;;  %s1565_s18 = sshll.u32 %s1949_s16, 7  ;;  %s1979_s16 = smov [#allocation9]  }
 0x4b2   : > { %v849_v38 = vpop.f32.mrb[10].mxu0  ;;  %s2337_s12 = scalar_lea.hbm %s2431_s24, %s1565_s18 }
 0x4b3   : > { %v1629_v39 = vpop.f32.mrb[11].mxu0 }
 0x4d5   : > { %v970_v42 = vpop.f32.mrb[12].mxu0 }
 0x4d6   : > { %977 = vrot.lane.b32.xlu0 %v970_v42, %s1977_s26  ;;  %v1640_v43 = vpop.f32.mrb[13].mxu0  ;;  %s523_s26 = scalar_lea.vmem [#allocation9], %s1524_s17  ;;  %s1875_s17 = sshll.u32 %s1979_s16, 4  ;;  %s1876_s17 = int_to_ptr.vmem [resolvable:$false] %s1875_s17 }
 0x4d7   : > { %v973_v44 = vpop.f32.mrb[14].mxu0  ;;  %s1877_s27 = scalar_lea.vmem %s1876_s17, 256 }
 0x4d8   : > { %v1641_v45 = vpop.f32.mrb[15].mxu0 }
 0x4dd   : > { %v1094_v46 = vpop.f32.mrb[16].mxu0 }
 0x4de   : > { %1101 = vrot.lane.b32.xlu1 %v1094_v46, %s1978_s19  ;;  %v1652_v47 = vpop.f32.mrb[17].mxu0  ;;  %s1408_s19 = sshll.u32 %s523_s26, 4  ;;  %s2339_s19 = int_to_ptr.vmem [resolvable:$true] %s1408_s19 }
 0x4df   : > { %v1097_v48 = vpop.f32.mrb[18].mxu0  ;;  %s1871_s21 = scalar_lea.vmem %s2339_s19, 128  ;;  %p1878_p2 = scmp.lt.s32.totalorder %s2339_s19, %s1876_s17 }
 0x4e0   : > { %v1653_v49 = vpop.f32.mrb[19].mxu0  ;;  %p1872_p13 = scmp.ne.s32.totalorder %s2339_s19, %s1871_s21  ;;  %p1879_p3 = scmp.lt.s32.totalorder %s1877_s27, %s1871_s21 }
 0x4e2   : > { %p1873_p10 = pnand %p1872_p13, %p2432_p8  ;;  %p1880_p5 = por %p1879_p3, %p1878_p2 }
 0x4e4   : > { %p1874_p11 = pneg %p1873_p10 }
 0x4e6   : > { %p1881_p6 = pnand %p1880_p5, %p1874_p11 }
 0x523   : > { %v854_v50 = vpop.permute.xlu1 %853 }
 0x524   : > { %857 = vst.msk [vmem:[#allocation3] sm:$0xff] %vm856_vm5, %v854_v50  ;;  %v1562_v50 = vld [vmem:[%s2429_s28] ss:$0 sm:$0xff] }
 0x548   : > { %v978_v51 = vpop.permute.xlu0 %977 }
 0x549   : > { %981 = vst.msk [vmem:[#allocation3] sm:$0xff] %vm980_vm6, %v978_v51 }
 0x550   : > { %v1102_v52 = vpop.permute.xlu1 %1101 }
 0x551   : > { %1105 = vst.msk [vmem:[#allocation3] sm:$0xff] %vm1104_vm7, %v1102_v52  ;;  %v1563_v52 = vld [vmem:[%s2430_s15] ss:$0 sm:$0xff] }
 0x558   : > { %v1106_v53 = vld [vmem:[#allocation3] sm:$0xff] }
 0x559   : > { %v1107_v54 = vpack.c.bf16 %v1106_v53, %v1106_v53 }
 0x55b   : > { %1659 = vmatmul.mubr.msk.bf16.vlgmr.msra.gmra.mrb[16].mxu1 %vm565_vm1, %v1107_v54 }
 0x55c   : > { %1678 = vmatprep.mubr.msk.bf16.mxu1 %vm1964_vm0, %v1963_v0  ;;  %1671 = vmatpush3.bf16.msra.mxu1 %v1789_v19 }
 0x55d   : > { %1672 = vmatprep.subr.bf16.mxu1 %v1963_v0 }
 0x560   : > { %1673 = vmatpush3.bf16.msra.mxu1 %v1790_v14 }
 0x561   : > { %1674 = vmatprep.subr.bf16.mxu1 %v1963_v0 }
 0x564   : > { %1675 = vmatpush3.bf16.msra.mxu1 %v1791_v20 }
 0x565   : > { %1676 = vmatprep.subr.bf16.mxu1 %v1963_v0 }
 0x568   : > { %1677 = vmatpush3.bf16.msra.mxu1 %v1792_v21 }
 0x62e   : > { %v1169_v56 = vpop.f32.mrb[16].mxu1 }
 0x62f   : > { %v1170_v58 = vadd.f32 %v1546_v55, %v1169_v56  ;;  %v1660_v59 = vpop.f32.mrb[17].mxu1 }
 0x630   : > { %v1172_v60 = vpop.f32.mrb[18].mxu1 }
 0x631   : > { %v1661_v61 = vpop.f32.mrb[19].mxu1  ;;  %v1175_v62 = vadd.f32 %v1170_v58, %v612_v57 }
 0x633   : > { %v1178_v63 = vsel %vm565_vm1, %v1175_v62, 0.0 }
 0x634   : > { %1179 = vadd.xlane.f32.xlu0 %v1178_v63 }
 0x6c1   : > { %v1180_v1 = vpop.xlane.xlu0 %1179 }
 0x6c2   : > { %v1182_v2 = vmul.f32 0.03125, %v1180_v1 }
 0x6c4   : > { %v1183_v3 = vsub.f32 %v1175_v62, %v1182_v2 }
 0x6c6   : > { %v1184_v4 = vmul.f32 %v1183_v3, %v1183_v3 }
 0x6c8   : > { %v1185_v5 = vsel %vm565_vm1, %v1184_v4, 0.0 }
 0x6c9   : > { %1186 = vadd.xlane.f32.xlu1 %v1185_v5 }
 0x756   : > { %v1187_v8 = vpop.xlane.xlu1 %1186 }
 0x757   : > { %v1188_v9 = vmul.f32 0.03125, %v1187_v8 }
 0x759   : > { %v1189_v10 = vadd.f32 1e-05, %v1188_v9 }
 0x75b   : > { %1809 = vrsqrt.f32 %v1189_v10 }
 0x765   : > { %v1810_v11 = vpop.eup %1809 }
 0x766   : > { %v1191_v13 = vmul.f32 %v1810_v11, %v1183_v3 }
 0x768   : > { %v1198_v16 = vmul.f32 %v1550_v12, %v1191_v13 }
 0x76a   : > { %v1205_v17 = vadd.f32 %v1551_v15, %v1198_v16 }
 0x76c   : > { %v1206_v18 = vpack.c.bf16 %v1205_v17, %v1205_v17 }
 0x76e   : > { %1667 = vmatmul.mubr.msk.bf16.vlgmr.msra.gmra.mrb[20].mxu0 %vm565_vm1, %v1206_v18 }
 0x841   : > { %v1267_v23 = vpop.f32.mrb[20].mxu0 }
 0x842   : > { %v1268_v24 = vadd.f32 %v1552_v22, %v1267_v23  ;;  %v1668_v25 = vpop.f32.mrb[21].mxu0 }
 0x843   : > { %v1270_v26 = vpop.f32.mrb[22].mxu0 }
 0x844   : > { %v1274_v27 = vmul.f32 0.70710677, %v1268_v24  ;;  %v1669_v28 = vpop.f32.mrb[23].mxu0  ;;  %v1273_v30 = vmul.f32 0.5, %v1268_v24 }
 0x846   : > { %1811 = verf.f32 %v1274_v27 }
 0x850   : > { %v1812_v29 = vpop.eup %1811 }
 0x851   : > { %v1276_v31 = vadd.f32 1.0, %v1812_v29 }
 0x853   : > { %v1277_v0 = vmul.f32 %v1276_v31, %v1273_v30 }
 0x855   : > { %v1278_v32 = vpack.c.bf16 %v1277_v0, %v1277_v0 }
 0x857   : > { %1679 = vmatmul.mubr.msk.bf16.vlgmr.msra.gmra.mrb[20].mxu1 %vm1318_vm8, %v1278_v32 }
 0x92a   : > { %v1356_v34 = vpop.f32.mrb[20].mxu1 }
 0x92b   : > { %v1357_v35 = vadd.f32 %v1556_v33, %v1356_v34  ;;  %v1680_v36 = vpop.f32.mrb[21].mxu1 }
 0x92c   : > { %v1359_v37 = vpop.f32.mrb[22].mxu1 }
 0x92d   : > { %v1681_v38 = vpop.f32.mrb[23].mxu1  ;;  %v1362_v39 = vadd.f32 %v1357_v35, %v1205_v17 }
 0x92f   : > { %v1365_v40 = vsel %vm565_vm1, %v1362_v39, 0.0 }
 0x930   : > { %1366 = vadd.xlane.f32.xlu0 %v1365_v40 }
 0x9bd   : > { %v1367_v41 = vpop.xlane.xlu0 %1366 }
 0x9be   : > { %v1368_v42 = vmul.f32 0.03125, %v1367_v41 }
 0x9c0   : > { %v1369_v43 = vsub.f32 %v1362_v39, %v1368_v42 }
 0x9c2   : > { %v1370_v44 = vmul.f32 %v1369_v43, %v1369_v43 }
 0x9c4   : > { %v1371_v45 = vsel %vm565_vm1, %v1370_v44, 0.0 }
 0x9c5   : > { %1372 = vadd.xlane.f32.xlu0 %v1371_v45 }
 0xa52   : > { %v1373_v46 = vpop.xlane.xlu0 %1372 }
 0xa53   : > { %v1374_v47 = vmul.f32 0.03125, %v1373_v46 }
 0xa55   : > { %v1375_v48 = vadd.f32 1e-05, %v1374_v47 }
 0xa57   : > { %1813 = vrsqrt.f32 %v1375_v48 }
 0xa61   : > { %v1814_v49 = vpop.eup %1813 }
 0xa62   : > { %v1377_v51 = vmul.f32 %v1814_v49, %v1369_v43 }
 0xa64   : > { %v1384_v53 = vmul.f32 %v1562_v50, %v1377_v51 }
 0xa66   : > { %v1391_v54 = vadd.f32 %v1563_v52, %v1384_v53 }
 0xa68   : > { %1392 = vst.msk [vmem:[%s523_s26] sm:$0xff] %vm565_vm1, %v1391_v54 }
 0xa69   : > { %1884 = shalt.err (!%p1881_p6)
}
 0xa6a   : > { %s1885_s14 = scalar_lea.hbm %s2337_s12, 128  ;;  %s1889_s25 = scalar_lea.hbm %s2431_s24, 256 }
 0xa6b   : > { %p1886_p7 = scmp.ne.s32.totalorder %s2337_s12, %s1885_s14  ;;  %p1890_p0 = scmp.lt.u32.totalorder %s2337_s12, %s2431_s24 }
 0xa6c   : > { %p1891_p4 = scmp.lt.u32.totalorder %s1889_s25, %s1885_s14  ;;  %p1893_p13 = scmp.lt.u32.totalorder %s1885_s14, %s2337_s12 }
 0xa6d   : > { %p1887_p9 = pnand %p1886_p7, %p2432_p8 }
 0xa6e   : > { %p1892_p1 = por %p1891_p4, %p1890_p0 }
 0xa6f   : > { %p1888_p12 = pneg %p1887_p9 }
 0xa70   : > { %p1894_p10 = por %p1893_p13, %p1892_p1 }
 0xa72   : > { %p1895_p11 = pnand %p1894_p10, %p1888_p12 }
 0xa74   : > { %1898 = shalt.err (!%p1895_p11)
}
 0xa75   : > { %1690 = dma.vmem_to_hbm [thread:$0]  (%p2432_p8), %s2339_s19, 128, %s2337_s12, %s1394_s13  }
 0xa76 PF: > { %s2433_s26 = sld [smem:[#allocation16_spill]]  ;;  %s2434_s20 = sld [smem:[#allocation13_spill]] }
 0xa77   : > { %s2435_s22 = sld [smem:[#allocation18_spill]] }
 0xa7c   : > { %p1707_p2 = scmp.ge.s32.totalorder %s2433_s26, 2  ;;  %s1420_s21 = sand.u32 1, %s2434_s20  }
 0xa7d   : > { %p2436_p3 = scmp.ne.s32.totalorder %s2435_s22, 0  ;;  %s1421_s16 = scalar_lea.sflag [#allocation6], %s1420_s21 }
 0xa7f   : > { %p1700_p5 = pnand %p1707_p2, %p2436_p3 }
 0xa81   : > { %1932 = dma.done.wait (!%p1700_p5), %s1421_s16, 128  }
 0xa82   : > { %1934 = vsyncadd (!%p1700_p5), %s1421_s16, 4294967168  ;;  %s29_s18 = sadd.s32 1, %s2433_s26   ;;  %s2437_s17 = sld [smem:[#allocation14_spill]] }
 0xa83   : > { %p26_p6 = scmp.ge.s32.totalorder %s29_s18, 4   ;;  %s2438_s15 = sld [smem:[#allocation19_spill]] }
 0xa84   : > { %s2439_s16 = sld [smem:[#allocation15_spill]]  ;;  %s2440_s23 = sld [smem:[#allocation17_spill]] }
 0xa85   : > { %s2441_s29 = smov %s1941_s30  ;;  %28 = sbr.rel (!%p26_p6) target bundleno = 10 (0xa), region = 128 }
 0xa88   : > { %s2442_s30 = smov %s2437_s17 }
 0xa8a   : > { %s2443_s17 = smov %s2440_s23 }
 0xa8c   :  { %1426 = vsyncpa [#allocation5], 1 }
 0xa8d   :  { %1428 = vsyncpa [#allocation5 + $0x1], 1 }
 0xa8e   :  { %1429 = vsyncpa [#allocation8], 1 }
 0xa8f   :  { %1430 = vsyncpa [#allocation6], 1 }
 0xa90   :  { %1432 = vsyncpa [#allocation6 + $0x1], 1 }

</bundles_post_ra>
